<compile_context>
chip_gen: v5e
topology: v5e:2x2
jax: 0.10.0
libtpu: 0.0.40
codegen_flags: <defaults>
</compile_context>

<pallas_src>
import jax
import jax.numpy as jnp
import numpy as np
from jax.experimental import pallas as pl
from jax.experimental.pallas import tpu as pltpu

# ---- small "config" consistent with the module ----
B = 2               # batch
S = 8               # seq_len
H = 32              # hidden_size
NUM_HEADS = 4       # num_attention_heads
NUM_KV_HEADS = 2    # num_key_value_heads  (GQA)
HEAD_DIM = H // NUM_HEADS          # 8
KV_DIM = NUM_KV_HEADS * HEAD_DIM   # 16
INTER = 64          # intermediate_size
EPS = 1e-5          # rms_norm_eps
SCALING = HEAD_DIM ** (-0.5)
REP = NUM_HEADS // NUM_KV_HEADS    # 2
BS = B * S
# attention_dropout = 0.0 (eval mode) -> dropout is identity.

QKV_FUSED = 2 * H + 3 * KV_DIM     # q | k | v | q_rot | k_rot = 112 columns
QKV_PAD = 128                      # pad fused QKV projection to a full 128-lane tile
ROPE_PAD = 128                     # packed cos_q | sin_q | cos_k | sin_k, padded to 128 lanes

# column offsets inside the fused QKV projection output
_Q0, _K0, _V0, _QR0, _KR0 = 0, H, H + KV_DIM, H + 2 * KV_DIM, 2 * H + 2 * KV_DIM


def decoder_layer_kernel(x_ref, rope_ref, wproj_ref, wod_ref, out_ref):
    x = x_ref[...].astype(jnp.float32)          # (BS, H) — both batches row-stacked
    rope = rope_ref[...]                         # (BS, 128): cos_q | sin_q | cos_k | sin_k | pad
    cos_q = rope[:, 0:H]
    sin_q = rope[:, H:2 * H]
    cos_k = rope[:, 2 * H:2 * H + KV_DIM]
    sin_k = rope[:, 2 * H + KV_DIM:2 * H + 2 * KV_DIM]

    wqkv = wproj_ref[0:H, :]                     # (H, 128)  rows already scaled by g1; q cols by SCALING
    wgu = wproj_ref[H:2 * H, :]                  # (H, 128)  rows already scaled by g2
    wo = wod_ref[0:H, :]                         # (H, H)
    wd = wod_ref[H:H + INTER, :]                 # (INTER, H)

    # ---------------- input RMSNorm (gamma folded into wqkv) ----------------
    var = jnp.mean(x * x, axis=-1, keepdims=True)
    xn = x * jax.lax.rsqrt(var + EPS)

    # ------- fused Q/K/V (+ pre-rotated Q/K) projection: one lane-dense (BS,128) matmul -------
    qkv = jnp.dot(xn, wqkv, preferred_element_type=jnp.float32)    # (BS, 128)
    q = qkv[:, _Q0:_Q0 + H]
    k = qkv[:, _K0:_K0 + KV_DIM]
    v = qkv[:, _V0:_V0 + KV_DIM]
    q_rot = qkv[:, _QR0:_QR0 + H]          # = rotate_half(q) per head (folded into weights)
    k_rot = qkv[:, _KR0:_KR0 + KV_DIM]     # = rotate_half(k) per head

    # RoPE: pure multiply-add (cos/sin pre-tiled per head wrapper-side).  q already carries SCALING.
    q_emb = q * cos_q + q_rot * sin_q      # (BS, H)
    k_emb = k * cos_k + k_rot * sin_k      # (BS, KV_DIM)

    # ------- GQA attention: per batch, per KV group; REP query heads row-stacked -------
    # The output projection is fused in: each head's context is projected through the matching
    # rows of wo and accumulated in registers (no VMEM scratch, no masked stores).
    attn_blocks = []
    for b in range(B):
        r0 = b * S
        attn_b = None
        for g in range(NUM_KV_HEADS):
            h0 = g * REP
            q_st = jnp.concatenate(
                [q_emb[r0:r0 + S, (h0 + r) * HEAD_DIM:(h0 + r + 1) * HEAD_DIM]
                 for r in range(REP)], axis=0)                        # (REP*S, HEAD_DIM)
            kg = k_emb[r0:r0 + S, g * HEAD_DIM:(g + 1) * HEAD_DIM]    # (S, HEAD_DIM)
            vg = v[r0:r0 + S, g * HEAD_DIM:(g + 1) * HEAD_DIM]        # (S, HEAD_DIM)

            s = jnp.dot(q_st, kg.T, preferred_element_type=jnp.float32)   # (REP*S, S), pre-scaled
            s = s - jnp.max(s, axis=-1, keepdims=True)
            p = jnp.exp(s)
            p = p * pl.reciprocal(jnp.sum(p, axis=-1, keepdims=True), approx=True)
            # TODO(synk): attention dropout omitted (p=attention_dropout, identity in eval mode).
            ctx_st = jnp.dot(p, vg, preferred_element_type=jnp.float32)   # (REP*S, HEAD_DIM)
            for r in range(REP):
                part = jnp.dot(ctx_st[r * S:(r + 1) * S, :],
                               wo[(h0 + r) * HEAD_DIM:(h0 + r + 1) * HEAD_DIM, :],
                               preferred_element_type=jnp.float32)        # (S, H)
                attn_b = part if attn_b is None else attn_b + part
        attn_blocks.append(attn_b)
    attn_out = jnp.concatenate(attn_blocks, axis=0)               # (BS, H)

    h1 = x + attn_out                                             # residual 1

    # ---------------- post-attention RMSNorm (gamma folded into wgu) ----------------
    var2 = jnp.mean(h1 * h1, axis=-1, keepdims=True)
    h1n = h1 * jax.lax.rsqrt(var2 + EPS)

    # ---------------- SwiGLU MLP (fused gate|up = one lane-dense (BS,128) matmul) ----------------
    gu = jnp.dot(h1n, wgu, preferred_element_type=jnp.float32)    # (BS, 2*INTER) = (BS, 128)
    gt = gu[:, :INTER]
    up = gu[:, INTER:]
    act = gt * jax.nn.sigmoid(gt)                                 # SiLU
    mlp_out = jnp.dot(act * up, wd, preferred_element_type=jnp.float32)

    out_ref[...] = (h1 + mlp_out).astype(out_ref.dtype)           # residual 2
    # TODO(synk): output kept (BS, H=32) (masked vst) and f32 MXU operands — both negligible at
    # this toy size; at real Llama sizes present a lane-dense output slab and cast to bf16.


# ---------------- wrapper-side packing (done ONCE at layer build time) ----------------
def _rotate_half_matrix(num_heads):
    """Block-diagonal matrix R such that (t @ R) == rotate_half(t) applied per head."""
    w = num_heads * HEAD_DIM
    half = HEAD_DIM // 2
    R = np.zeros((w, w), dtype=np.float32)
    for h in range(num_heads):
        base = h * HEAD_DIM
        for i in range(half):
            R[base + i + half, base + i] = -1.0    # out[i]        = -in[i + half]
            R[base + i, base + i + half] = 1.0     # out[i + half] =  in[i]
    return jnp.asarray(R)


def pack_params(params):
    wq, wk, wv, wo, wg, wu, wd, g1, g2 = params
    Rq = _rotate_half_matrix(NUM_HEADS)
    Rk = _rotate_half_matrix(NUM_KV_HEADS)
    wq_s = wq * SCALING                                    # fold softmax scaling into q columns
    wqkv = jnp.concatenate([wq_s, wk, wv, wq_s @ Rq, wk @ Rk], axis=1)   # (H, 112)
    wqkv = jnp.pad(wqkv, ((0, 0), (0, QKV_PAD - QKV_FUSED)))            # (H, 128) lane-dense
    wqkv = g1.reshape(H, 1) * wqkv                         # fold input RMSNorm gamma (exact)
    wgu = g2.reshape(H, 1) * jnp.concatenate([wg, wu], axis=1)          # (H, 128), gamma folded
    w_proj = jnp.concatenate([wqkv, wgu], axis=0)          # (2H, 128): one weight slab
    wod = jnp.concatenate([wo, wd], axis=0)                # (H+INTER, H): wo | wd stacked
    return w_proj, wod


def pack_rope(cos, sin):
    # cos/sin are batch-invariant: build one (B*S, 128) lane-dense constant slab at init.
    cos_q = jnp.tile(cos, (1, 1, NUM_HEADS))       # (B, S, H)
    sin_q = jnp.tile(sin, (1, 1, NUM_HEADS))
    cos_k = jnp.tile(cos, (1, 1, NUM_KV_HEADS))    # (B, S, KV_DIM)
    sin_k = jnp.tile(sin, (1, 1, NUM_KV_HEADS))
    packed = jnp.concatenate([cos_q, sin_q, cos_k, sin_k], axis=-1)              # (B, S, 96)
    packed = jnp.pad(packed, ((0, 0), (0, 0), (0, ROPE_PAD - packed.shape[-1]))) # (B, S, 128)
    return packed.reshape(BS, ROPE_PAD)


def make_decoder_layer(params, cos, sin):
    """Pack weights & rope once; return a jitted forward(x) -> (B, S, H)."""
    w_proj, wod = pack_params(params)
    rope = pack_rope(cos, sin)

    kernel_fn = pl.pallas_call(
        decoder_layer_kernel,
        out_shape=jax.ShapeDtypeStruct((BS, H), jnp.float32),
        grid_spec=pltpu.PrefetchScalarGridSpec(
            num_scalar_prefetch=0,
            grid=(1,),                                                 # batch grid collapsed
            in_specs=[
                pl.BlockSpec((BS, H), lambda i: (0, 0)),               # x (both batches stacked)
                pl.BlockSpec((BS, ROPE_PAD), lambda i: (0, 0)),        # packed cos/sin (lane-dense)
                pl.BlockSpec((2 * H, QKV_PAD), lambda i: (0, 0)),      # wqkv | wgu slab
                pl.BlockSpec((H + INTER, H), lambda i: (0, 0)),        # wo | wd slab
            ],
            out_specs=pl.BlockSpec((BS, H), lambda i: (0, 0)),
        ),
        compiler_params=pltpu.CompilerParams(
            dimension_semantics=("arbitrary",)),   # single step; use grid=(B,) "parallel" on v7x at scale
    )

    def fwd(x):
        out = kernel_fn(x.reshape(BS, H), rope, w_proj, wod)
        return out.reshape(B, S, H)

    return jax.jit(fwd)


# ---------------- pure-JAX reference (mirrors the PyTorch module) ----------------
def reference(x, cos, sin, params):
    wq, wk, wv, wo, wg, wu, wd, g1, g2 = params

    def rms(t, g):
        var = jnp.mean(t * t, axis=-1, keepdims=True)
        return t * jax.lax.rsqrt(var + EPS) * g

    def rot_half(t):
        half = t.shape[-1] // 2
        return jnp.concatenate([-t[..., half:], t[..., :half]], axis=-1)

    xn = rms(x, g1[0])
    q = (xn @ wq).reshape(B, S, NUM_HEADS, HEAD_DIM)
    k = (xn @ wk).reshape(B, S, NUM_KV_HEADS, HEAD_DIM)
    v = (xn @ wv).reshape(B, S, NUM_KV_HEADS, HEAD_DIM)
    cb, sb = cos[:, :, None, :], sin[:, :, None, :]
    q = q * cb + rot_half(q) * sb
    k = k * cb + rot_half(k) * sb
    q, k, v = (t.transpose(0, 2, 1, 3) for t in (q, k, v))
    k = jnp.repeat(k, REP, axis=1)
    v = jnp.repeat(v, REP, axis=1)
    scores = jnp.einsum('bhqd,bhkd->bhqk', q, k) * SCALING
    p = jax.nn.softmax(scores, axis=-1)
    ctx = jnp.einsum('bhqk,bhkd->bhqd', p, v)
    ctx = ctx.transpose(0, 2, 1, 3).reshape(B, S, H)
    h1 = x + ctx @ wo
    h1n = rms(h1, g2[0])
    out = h1 + (jax.nn.silu(h1n @ wg) * (h1n @ wu)) @ wd
    return out


if __name__ == "__main__":
    key = jax.random.PRNGKey(0)
    keys = jax.random.split(key, 9)

    x = jax.random.normal(keys[0], (B, S, H), dtype=jnp.float32)

    # rotary embeddings (standard llama: cat(freqs, freqs))
    inv_freq = 1.0 / (10000.0 ** (jnp.arange(0, HEAD_DIM, 2, dtype=jnp.float32) / HEAD_DIM))
    pos = jnp.arange(S, dtype=jnp.float32)
    freqs = pos[:, None] * inv_freq[None, :]                 # (S, HEAD_DIM/2)
    emb = jnp.concatenate([freqs, freqs], axis=-1)           # (S, HEAD_DIM)
    cos = jnp.broadcast_to(jnp.cos(emb)[None], (B, S, HEAD_DIM))
    sin = jnp.broadcast_to(jnp.sin(emb)[None], (B, S, HEAD_DIM))

    scale = 0.05
    wq = scale * jax.random.normal(keys[1], (H, H), dtype=jnp.float32)
    wk = scale * jax.random.normal(keys[2], (H, KV_DIM), dtype=jnp.float32)
    wv = scale * jax.random.normal(keys[3], (H, KV_DIM), dtype=jnp.float32)
    wo = scale * jax.random.normal(keys[4], (H, H), dtype=jnp.float32)
    wg = scale * jax.random.normal(keys[5], (H, INTER), dtype=jnp.float32)
    wu = scale * jax.random.normal(keys[6], (H, INTER), dtype=jnp.float32)
    wd = scale * jax.random.normal(keys[7], (INTER, H), dtype=jnp.float32)
    g1 = jnp.ones((1, H), dtype=jnp.float32)
    g2 = jnp.ones((1, H), dtype=jnp.float32)
    params = (wq, wk, wv, wo, wg, wu, wd, g1, g2)

    layer = make_decoder_layer(params, cos, sin)   # packing hoisted out of the per-call path
    out = layer(x)
    out = jax.block_until_ready(out)

    ref = reference(x, cos, sin, params)
    # Tolerance loosened (vs 2e-4) because the softmax denominator uses the approximate EUP
    # reciprocal (pl.reciprocal(..., approx=True)) — fine for inference.
    np.testing.assert_allclose(np.asarray(out), np.asarray(ref), rtol=5e-3, atol=5e-3)

    print("KERNEL_OK")
</pallas_src>

<mosaic_0001>
module attributes {stable_mosaic.version = 11 : i64} {
  func.func @decoder_layer_kernel(%arg0: i32, %arg1: memref<16x32xf32, #tpu.memory_space<vmem>>, %arg2: memref<16x128xf32, #tpu.memory_space<vmem>>, %arg3: memref<64x128xf32, #tpu.memory_space<vmem>>, %arg4: memref<96x32xf32, #tpu.memory_space<vmem>>, %arg5: memref<16x32xf32, #tpu.memory_space<vmem>>) attributes {dimension_semantics = [#tpu.dimension_semantics<arbitrary>], iteration_bounds = array<i64: 1>, scalar_prefetch = 0 : i64, scratch_operands = 0 : i64, tpu.core_type = #tpu.core_type<tc>, window_params = [{pipeline_mode = #tpu.pipeline_mode<synchronous>, transform_indices = @transform_0, window_bounds = array<i64: 16, 32>}, {pipeline_mode = #tpu.pipeline_mode<synchronous>, transform_indices = @transform_1, window_bounds = array<i64: 16, 128>}, {pipeline_mode = #tpu.pipeline_mode<synchronous>, transform_indices = @transform_2, window_bounds = array<i64: 64, 128>}, {pipeline_mode = #tpu.pipeline_mode<synchronous>, transform_indices = @transform_3, window_bounds = array<i64: 96, 32>}, {pipeline_mode = #tpu.pipeline_mode<synchronous>, transform_indices = @transform_4, window_bounds = array<i64: 16, 32>}]} {
    %c0 = arith.constant 0 : index
    %c0_0 = arith.constant 0 : index
    %0 = vector.load %arg1[%c0, %c0_0] : memref<16x32xf32, #tpu.memory_space<vmem>>, vector<16x32xf32>
    %c0_1 = arith.constant 0 : index
    %c0_2 = arith.constant 0 : index
    %1 = vector.load %arg2[%c0_1, %c0_2] : memref<16x128xf32, #tpu.memory_space<vmem>>, vector<16x128xf32>
    %2 = vector.extract_strided_slice %1 {offsets = [0, 0], sizes = [16, 32], strides = [1, 1]} : vector<16x128xf32> to vector<16x32xf32>
    %3 = vector.extract_strided_slice %1 {offsets = [0, 32], sizes = [16, 32], strides = [1, 1]} : vector<16x128xf32> to vector<16x32xf32>
    %4 = vector.extract_strided_slice %1 {offsets = [0, 64], sizes = [16, 16], strides = [1, 1]} : vector<16x128xf32> to vector<16x16xf32>
    %5 = vector.extract_strided_slice %1 {offsets = [0, 80], sizes = [16, 16], strides = [1, 1]} : vector<16x128xf32> to vector<16x16xf32>
    %c0_3 = arith.constant 0 : index
    %c0_4 = arith.constant 0 : index
    %6 = vector.load %arg3[%c0_3, %c0_4] : memref<64x128xf32, #tpu.memory_space<vmem>>, vector<32x128xf32>
    %c32 = arith.constant 32 : index
    %c0_5 = arith.constant 0 : index
    %7 = vector.load %arg3[%c32, %c0_5] : memref<64x128xf32, #tpu.memory_space<vmem>>, vector<32x128xf32>
    %c0_6 = arith.constant 0 : index
    %c0_7 = arith.constant 0 : index
    %8 = vector.load %arg4[%c0_6, %c0_7] : memref<96x32xf32, #tpu.memory_space<vmem>>, vector<32x32xf32>
    %c32_8 = arith.constant 32 : index
    %c0_9 = arith.constant 0 : index
    %9 = vector.load %arg4[%c32_8, %c0_9] : memref<96x32xf32, #tpu.memory_space<vmem>>, vector<64x32xf32>
    %10 = arith.mulf %0, %0 : vector<16x32xf32>
    %cst = arith.constant dense<0.000000e+00> : vector<16xf32>
    %11 = vector.multi_reduction <add>, %10, %cst [1] : vector<16x32xf32> to vector<16xf32>
    %12 = vector.shape_cast %11 : vector<16xf32> to vector<16x1xf32>
    %cst_10 = arith.constant 3.200000e+01 : f32
    %13 = vector.broadcast %cst_10 : f32 to vector<16x1xf32>
    %14 = arith.divf %12, %13 : vector<16x1xf32>
    %cst_11 = arith.constant 9.99999974E-6 : f32
    %15 = vector.broadcast %cst_11 : f32 to vector<16x1xf32>
    %16 = arith.addf %14, %15 : vector<16x1xf32>
    %17 = math.rsqrt %16 : vector<16x1xf32>
    %18 = vector.broadcast %17 : vector<16x1xf32> to vector<16x32xf32>
    %19 = arith.mulf %0, %18 : vector<16x32xf32>
    %cst_12 = arith.constant dense<0.000000e+00> : vector<16x128xf32>
    %20 = tpu.matmul %19, %6, %cst_12 {dimension_numbers = #tpu.dot_dimension_numbers<[1], [0], [0], [1], [0, 0, 1, 1], [], []>} : vector<16x32xf32>, vector<32x128xf32>, vector<16x128xf32> -> vector<16x128xf32>
    %21 = vector.extract_strided_slice %20 {offsets = [0, 0], sizes = [16, 32], strides = [1, 1]} : vector<16x128xf32> to vector<16x32xf32>
    %22 = vector.extract_strided_slice %20 {offsets = [0, 32], sizes = [16, 16], strides = [1, 1]} : vector<16x128xf32> to vector<16x16xf32>
    %23 = vector.extract_strided_slice %20 {offsets = [0, 48], sizes = [16, 16], strides = [1, 1]} : vector<16x128xf32> to vector<16x16xf32>
    %24 = vector.extract_strided_slice %20 {offsets = [0, 64], sizes = [16, 32], strides = [1, 1]} : vector<16x128xf32> to vector<16x32xf32>
    %25 = vector.extract_strided_slice %20 {offsets = [0, 96], sizes = [16, 16], strides = [1, 1]} : vector<16x128xf32> to vector<16x16xf32>
    %26 = arith.mulf %21, %2 : vector<16x32xf32>
    %27 = arith.mulf %24, %3 : vector<16x32xf32>
    %28 = arith.addf %26, %27 : vector<16x32xf32>
    %29 = arith.mulf %22, %4 : vector<16x16xf32>
    %30 = arith.mulf %25, %5 : vector<16x16xf32>
    %31 = arith.addf %29, %30 : vector<16x16xf32>
    %32 = vector.extract_strided_slice %28 {offsets = [0, 0], sizes = [8, 8], strides = [1, 1]} : vector<16x32xf32> to vector<8x8xf32>
    %33 = vector.extract_strided_slice %28 {offsets = [0, 8], sizes = [8, 8], strides = [1, 1]} : vector<16x32xf32> to vector<8x8xf32>
    %34 = tpu.concatenate %32, %33 in 0 : vector<8x8xf32>, vector<8x8xf32> -> vector<16x8xf32>
    %35 = vector.extract_strided_slice %31 {offsets = [0, 0], sizes = [8, 8], strides = [1, 1]} : vector<16x16xf32> to vector<8x8xf32>
    %36 = vector.extract_strided_slice %23 {offsets = [0, 0], sizes = [8, 8], strides = [1, 1]} : vector<16x16xf32> to vector<8x8xf32>
    %37 = tpu.transpose %35, [1, 0] : vector<8x8xf32> -> vector<8x8xf32>
    %cst_13 = arith.constant dense<0.000000e+00> : vector<16x8xf32>
    %38 = tpu.matmul %34, %37, %cst_13 {dimension_numbers = #tpu.dot_dimension_numbers<[1], [0], [0], [1], [0, 0, 1, 1], [], []>} : vector<16x8xf32>, vector<8x8xf32>, vector<16x8xf32> -> vector<16x8xf32>
    %cst_14 = arith.constant dense<0xFF800000> : vector<16xf32>
    %39 = vector.multi_reduction <maximumf>, %38, %cst_14 [1] : vector<16x8xf32> to vector<16xf32>
    %40 = vector.shape_cast %39 : vector<16xf32> to vector<16x1xf32>
    %41 = vector.broadcast %40 : vector<16x1xf32> to vector<16x8xf32>
    %42 = arith.subf %38, %41 : vector<16x8xf32>
    %43 = math.exp %42 : vector<16x8xf32>
    %cst_15 = arith.constant dense<0.000000e+00> : vector<16xf32>
    %44 = vector.multi_reduction <add>, %43, %cst_15 [1] : vector<16x8xf32> to vector<16xf32>
    %45 = vector.shape_cast %44 : vector<16xf32> to vector<16x1xf32>
    %46 = tpu.reciprocal %45 {approx = true} : vector<16x1xf32> -> vector<16x1xf32>
    %47 = vector.broadcast %46 : vector<16x1xf32> to vector<16x8xf32>
    %48 = arith.mulf %43, %47 : vector<16x8xf32>
    %cst_16 = arith.constant dense<0.000000e+00> : vector<16x8xf32>
    %49 = tpu.matmul %48, %36, %cst_16 {dimension_numbers = #tpu.dot_dimension_numbers<[1], [0], [0], [1], [0, 0, 1, 1], [], []>} : vector<16x8xf32>, vector<8x8xf32>, vector<16x8xf32> -> vector<16x8xf32>
    %50 = vector.extract_strided_slice %49 {offsets = [0, 0], sizes = [8, 8], strides = [1, 1]} : vector<16x8xf32> to vector<8x8xf32>
    %51 = vector.extract_strided_slice %8 {offsets = [0, 0], sizes = [8, 32], strides = [1, 1]} : vector<32x32xf32> to vector<8x32xf32>
    %cst_17 = arith.constant dense<0.000000e+00> : vector<8x32xf32>
    %52 = tpu.matmul %50, %51, %cst_17 {dimension_numbers = #tpu.dot_dimension_numbers<[1], [0], [0], [1], [0, 0, 1, 1], [], []>} : vector<8x8xf32>, vector<8x32xf32>, vector<8x32xf32> -> vector<8x32xf32>
    %53 = vector.extract_strided_slice %49 {offsets = [8, 0], sizes = [8, 8], strides = [1, 1]} : vector<16x8xf32> to vector<8x8xf32>
    %54 = vector.extract_strided_slice %8 {offsets = [8, 0], sizes = [8, 32], strides = [1, 1]} : vector<32x32xf32> to vector<8x32xf32>
    %cst_18 = arith.constant dense<0.000000e+00> : vector<8x32xf32>
    %55 = tpu.matmul %53, %54, %cst_18 {dimension_numbers = #tpu.dot_dimension_numbers<[1], [0], [0], [1], [0, 0, 1, 1], [], []>} : vector<8x8xf32>, vector<8x32xf32>, vector<8x32xf32> -> vector<8x32xf32>
    %56 = arith.addf %52, %55 : vector<8x32xf32>
    %57 = vector.extract_strided_slice %28 {offsets = [0, 16], sizes = [8, 8], strides = [1, 1]} : vector<16x32xf32> to vector<8x8xf32>
    %58 = vector.extract_strided_slice %28 {offsets = [0, 24], sizes = [8, 8], strides = [1, 1]} : vector<16x32xf32> to vector<8x8xf32>
    %59 = tpu.concatenate %57, %58 in 0 : vector<8x8xf32>, vector<8x8xf32> -> vector<16x8xf32>
    %60 = vector.extract_strided_slice %31 {offsets = [0, 8], sizes = [8, 8], strides = [1, 1]} : vector<16x16xf32> to vector<8x8xf32>
    %61 = vector.extract_strided_slice %23 {offsets = [0, 8], sizes = [8, 8], strides = [1, 1]} : vector<16x16xf32> to vector<8x8xf32>
    %62 = tpu.transpose %60, [1, 0] : vector<8x8xf32> -> vector<8x8xf32>
    %cst_19 = arith.constant dense<0.000000e+00> : vector<16x8xf32>
    %63 = tpu.matmul %59, %62, %cst_19 {dimension_numbers = #tpu.dot_dimension_numbers<[1], [0], [0], [1], [0, 0, 1, 1], [], []>} : vector<16x8xf32>, vector<8x8xf32>, vector<16x8xf32> -> vector<16x8xf32>
    %cst_20 = arith.constant dense<0xFF800000> : vector<16xf32>
    %64 = vector.multi_reduction <maximumf>, %63, %cst_20 [1] : vector<16x8xf32> to vector<16xf32>
    %65 = vector.shape_cast %64 : vector<16xf32> to vector<16x1xf32>
    %66 = vector.broadcast %65 : vector<16x1xf32> to vector<16x8xf32>
    %67 = arith.subf %63, %66 : vector<16x8xf32>
    %68 = math.exp %67 : vector<16x8xf32>
    %cst_21 = arith.constant dense<0.000000e+00> : vector<16xf32>
    %69 = vector.multi_reduction <add>, %68, %cst_21 [1] : vector<16x8xf32> to vector<16xf32>
    %70 = vector.shape_cast %69 : vector<16xf32> to vector<16x1xf32>
    %71 = tpu.reciprocal %70 {approx = true} : vector<16x1xf32> -> vector<16x1xf32>
    %72 = vector.broadcast %71 : vector<16x1xf32> to vector<16x8xf32>
    %73 = arith.mulf %68, %72 : vector<16x8xf32>
    %cst_22 = arith.constant dense<0.000000e+00> : vector<16x8xf32>
    %74 = tpu.matmul %73, %61, %cst_22 {dimension_numbers = #tpu.dot_dimension_numbers<[1], [0], [0], [1], [0, 0, 1, 1], [], []>} : vector<16x8xf32>, vector<8x8xf32>, vector<16x8xf32> -> vector<16x8xf32>
    %75 = vector.extract_strided_slice %74 {offsets = [0, 0], sizes = [8, 8], strides = [1, 1]} : vector<16x8xf32> to vector<8x8xf32>
    %76 = vector.extract_strided_slice %8 {offsets = [16, 0], sizes = [8, 32], strides = [1, 1]} : vector<32x32xf32> to vector<8x32xf32>
    %cst_23 = arith.constant dense<0.000000e+00> : vector<8x32xf32>
    %77 = tpu.matmul %75, %76, %cst_23 {dimension_numbers = #tpu.dot_dimension_numbers<[1], [0], [0], [1], [0, 0, 1, 1], [], []>} : vector<8x8xf32>, vector<8x32xf32>, vector<8x32xf32> -> vector<8x32xf32>
    %78 = arith.addf %56, %77 : vector<8x32xf32>
    %79 = vector.extract_strided_slice %74 {offsets = [8, 0], sizes = [8, 8], strides = [1, 1]} : vector<16x8xf32> to vector<8x8xf32>
    %80 = vector.extract_strided_slice %8 {offsets = [24, 0], sizes = [8, 32], strides = [1, 1]} : vector<32x32xf32> to vector<8x32xf32>
    %cst_24 = arith.constant dense<0.000000e+00> : vector<8x32xf32>
    %81 = tpu.matmul %79, %80, %cst_24 {dimension_numbers = #tpu.dot_dimension_numbers<[1], [0], [0], [1], [0, 0, 1, 1], [], []>} : vector<8x8xf32>, vector<8x32xf32>, vector<8x32xf32> -> vector<8x32xf32>
    %82 = arith.addf %78, %81 : vector<8x32xf32>
    %83 = vector.extract_strided_slice %28 {offsets = [8, 0], sizes = [8, 8], strides = [1, 1]} : vector<16x32xf32> to vector<8x8xf32>
    %84 = vector.extract_strided_slice %28 {offsets = [8, 8], sizes = [8, 8], strides = [1, 1]} : vector<16x32xf32> to vector<8x8xf32>
    %85 = tpu.concatenate %83, %84 in 0 : vector<8x8xf32>, vector<8x8xf32> -> vector<16x8xf32>
    %86 = vector.extract_strided_slice %31 {offsets = [8, 0], sizes = [8, 8], strides = [1, 1]} : vector<16x16xf32> to vector<8x8xf32>
    %87 = vector.extract_strided_slice %23 {offsets = [8, 0], sizes = [8, 8], strides = [1, 1]} : vector<16x16xf32> to vector<8x8xf32>
    %88 = tpu.transpose %86, [1, 0] : vector<8x8xf32> -> vector<8x8xf32>
    %cst_25 = arith.constant dense<0.000000e+00> : vector<16x8xf32>
    %89 = tpu.matmul %85, %88, %cst_25 {dimension_numbers = #tpu.dot_dimension_numbers<[1], [0], [0], [1], [0, 0, 1, 1], [], []>} : vector<16x8xf32>, vector<8x8xf32>, vector<16x8xf32> -> vector<16x8xf32>
    %cst_26 = arith.constant dense<0xFF800000> : vector<16xf32>
    %90 = vector.multi_reduction <maximumf>, %89, %cst_26 [1] : vector<16x8xf32> to vector<16xf32>
    %91 = vector.shape_cast %90 : vector<16xf32> to vector<16x1xf32>
    %92 = vector.broadcast %91 : vector<16x1xf32> to vector<16x8xf32>
    %93 = arith.subf %89, %92 : vector<16x8xf32>
    %94 = math.exp %93 : vector<16x8xf32>
    %cst_27 = arith.constant dense<0.000000e+00> : vector<16xf32>
    %95 = vector.multi_reduction <add>, %94, %cst_27 [1] : vector<16x8xf32> to vector<16xf32>
    %96 = vector.shape_cast %95 : vector<16xf32> to vector<16x1xf32>
    %97 = tpu.reciprocal %96 {approx = true} : vector<16x1xf32> -> vector<16x1xf32>
    %98 = vector.broadcast %97 : vector<16x1xf32> to vector<16x8xf32>
    %99 = arith.mulf %94, %98 : vector<16x8xf32>
    %cst_28 = arith.constant dense<0.000000e+00> : vector<16x8xf32>
    %100 = tpu.matmul %99, %87, %cst_28 {dimension_numbers = #tpu.dot_dimension_numbers<[1], [0], [0], [1], [0, 0, 1, 1], [], []>} : vector<16x8xf32>, vector<8x8xf32>, vector<16x8xf32> -> vector<16x8xf32>
    %101 = vector.extract_strided_slice %100 {offsets = [0, 0], sizes = [8, 8], strides = [1, 1]} : vector<16x8xf32> to vector<8x8xf32>
    %102 = vector.extract_strided_slice %8 {offsets = [0, 0], sizes = [8, 32], strides = [1, 1]} : vector<32x32xf32> to vector<8x32xf32>
    %cst_29 = arith.constant dense<0.000000e+00> : vector<8x32xf32>
    %103 = tpu.matmul %101, %102, %cst_29 {dimension_numbers = #tpu.dot_dimension_numbers<[1], [0], [0], [1], [0, 0, 1, 1], [], []>} : vector<8x8xf32>, vector<8x32xf32>, vector<8x32xf32> -> vector<8x32xf32>
    %104 = vector.extract_strided_slice %100 {offsets = [8, 0], sizes = [8, 8], strides = [1, 1]} : vector<16x8xf32> to vector<8x8xf32>
    %105 = vector.extract_strided_slice %8 {offsets = [8, 0], sizes = [8, 32], strides = [1, 1]} : vector<32x32xf32> to vector<8x32xf32>
    %cst_30 = arith.constant dense<0.000000e+00> : vector<8x32xf32>
    %106 = tpu.matmul %104, %105, %cst_30 {dimension_numbers = #tpu.dot_dimension_numbers<[1], [0], [0], [1], [0, 0, 1, 1], [], []>} : vector<8x8xf32>, vector<8x32xf32>, vector<8x32xf32> -> vector<8x32xf32>
    %107 = arith.addf %103, %106 : vector<8x32xf32>
    %108 = vector.extract_strided_slice %28 {offsets = [8, 16], sizes = [8, 8], strides = [1, 1]} : vector<16x32xf32> to vector<8x8xf32>
    %109 = vector.extract_strided_slice %28 {offsets = [8, 24], sizes = [8, 8], strides = [1, 1]} : vector<16x32xf32> to vector<8x8xf32>
    %110 = tpu.concatenate %108, %109 in 0 : vector<8x8xf32>, vector<8x8xf32> -> vector<16x8xf32>
    %111 = vector.extract_strided_slice %31 {offsets = [8, 8], sizes = [8, 8], strides = [1, 1]} : vector<16x16xf32> to vector<8x8xf32>
    %112 = vector.extract_strided_slice %23 {offsets = [8, 8], sizes = [8, 8], strides = [1, 1]} : vector<16x16xf32> to vector<8x8xf32>
    %113 = tpu.transpose %111, [1, 0] : vector<8x8xf32> -> vector<8x8xf32>
    %cst_31 = arith.constant dense<0.000000e+00> : vector<16x8xf32>
    %114 = tpu.matmul %110, %113, %cst_31 {dimension_numbers = #tpu.dot_dimension_numbers<[1], [0], [0], [1], [0, 0, 1, 1], [], []>} : vector<16x8xf32>, vector<8x8xf32>, vector<16x8xf32> -> vector<16x8xf32>
    %cst_32 = arith.constant dense<0xFF800000> : vector<16xf32>
    %115 = vector.multi_reduction <maximumf>, %114, %cst_32 [1] : vector<16x8xf32> to vector<16xf32>
    %116 = vector.shape_cast %115 : vector<16xf32> to vector<16x1xf32>
    %117 = vector.broadcast %116 : vector<16x1xf32> to vector<16x8xf32>
    %118 = arith.subf %114, %117 : vector<16x8xf32>
    %119 = math.exp %118 : vector<16x8xf32>
    %cst_33 = arith.constant dense<0.000000e+00> : vector<16xf32>
    %120 = vector.multi_reduction <add>, %119, %cst_33 [1] : vector<16x8xf32> to vector<16xf32>
    %121 = vector.shape_cast %120 : vector<16xf32> to vector<16x1xf32>
    %122 = tpu.reciprocal %121 {approx = true} : vector<16x1xf32> -> vector<16x1xf32>
    %123 = vector.broadcast %122 : vector<16x1xf32> to vector<16x8xf32>
    %124 = arith.mulf %119, %123 : vector<16x8xf32>
    %cst_34 = arith.constant dense<0.000000e+00> : vector<16x8xf32>
    %125 = tpu.matmul %124, %112, %cst_34 {dimension_numbers = #tpu.dot_dimension_numbers<[1], [0], [0], [1], [0, 0, 1, 1], [], []>} : vector<16x8xf32>, vector<8x8xf32>, vector<16x8xf32> -> vector<16x8xf32>
    %126 = vector.extract_strided_slice %125 {offsets = [0, 0], sizes = [8, 8], strides = [1, 1]} : vector<16x8xf32> to vector<8x8xf32>
    %127 = vector.extract_strided_slice %8 {offsets = [16, 0], sizes = [8, 32], strides = [1, 1]} : vector<32x32xf32> to vector<8x32xf32>
    %cst_35 = arith.constant dense<0.000000e+00> : vector<8x32xf32>
    %128 = tpu.matmul %126, %127, %cst_35 {dimension_numbers = #tpu.dot_dimension_numbers<[1], [0], [0], [1], [0, 0, 1, 1], [], []>} : vector<8x8xf32>, vector<8x32xf32>, vector<8x32xf32> -> vector<8x32xf32>
    %129 = arith.addf %107, %128 : vector<8x32xf32>
    %130 = vector.extract_strided_slice %125 {offsets = [8, 0], sizes = [8, 8], strides = [1, 1]} : vector<16x8xf32> to vector<8x8xf32>
    %131 = vector.extract_strided_slice %8 {offsets = [24, 0], sizes = [8, 32], strides = [1, 1]} : vector<32x32xf32> to vector<8x32xf32>
    %cst_36 = arith.constant dense<0.000000e+00> : vector<8x32xf32>
    %132 = tpu.matmul %130, %131, %cst_36 {dimension_numbers = #tpu.dot_dimension_numbers<[1], [0], [0], [1], [0, 0, 1, 1], [], []>} : vector<8x8xf32>, vector<8x32xf32>, vector<8x32xf32> -> vector<8x32xf32>
    %133 = arith.addf %129, %132 : vector<8x32xf32>
    %134 = tpu.concatenate %82, %133 in 0 : vector<8x32xf32>, vector<8x32xf32> -> vector<16x32xf32>
    %135 = arith.addf %0, %134 : vector<16x32xf32>
    %136 = arith.mulf %135, %135 : vector<16x32xf32>
    %cst_37 = arith.constant dense<0.000000e+00> : vector<16xf32>
    %137 = vector.multi_reduction <add>, %136, %cst_37 [1] : vector<16x32xf32> to vector<16xf32>
    %138 = vector.shape_cast %137 : vector<16xf32> to vector<16x1xf32>
    %cst_38 = arith.constant 3.200000e+01 : f32
    %139 = vector.broadcast %cst_38 : f32 to vector<16x1xf32>
    %140 = arith.divf %138, %139 : vector<16x1xf32>
    %cst_39 = arith.constant 9.99999974E-6 : f32
    %141 = vector.broadcast %cst_39 : f32 to vector<16x1xf32>
    %142 = arith.addf %140, %141 : vector<16x1xf32>
    %143 = math.rsqrt %142 : vector<16x1xf32>
    %144 = vector.broadcast %143 : vector<16x1xf32> to vector<16x32xf32>
    %145 = arith.mulf %135, %144 : vector<16x32xf32>
    %cst_40 = arith.constant dense<0.000000e+00> : vector<16x128xf32>
    %146 = tpu.matmul %145, %7, %cst_40 {dimension_numbers = #tpu.dot_dimension_numbers<[1], [0], [0], [1], [0, 0, 1, 1], [], []>} : vector<16x32xf32>, vector<32x128xf32>, vector<16x128xf32> -> vector<16x128xf32>
    %147 = vector.extract_strided_slice %146 {offsets = [0, 0], sizes = [16, 64], strides = [1, 1]} : vector<16x128xf32> to vector<16x64xf32>
    %148 = vector.extract_strided_slice %146 {offsets = [0, 64], sizes = [16, 64], strides = [1, 1]} : vector<16x128xf32> to vector<16x64xf32>
    %149 = arith.negf %147 : vector<16x64xf32>
    %150 = math.exp %149 : vector<16x64xf32>
    %cst_41 = arith.constant 1.000000e+00 : f32
    %151 = vector.broadcast %cst_41 : f32 to vector<16x64xf32>
    %152 = arith.addf %151, %150 : vector<16x64xf32>
    %153 = arith.divf %151, %152 : vector<16x64xf32>
    %154 = arith.mulf %147, %153 : vector<16x64xf32>
    %155 = arith.mulf %154, %148 : vector<16x64xf32>
    %cst_42 = arith.constant dense<0.000000e+00> : vector<16x32xf32>
    %156 = tpu.matmul %155, %9, %cst_42 {dimension_numbers = #tpu.dot_dimension_numbers<[1], [0], [0], [1], [0, 0, 1, 1], [], []>} : vector<16x64xf32>, vector<64x32xf32>, vector<16x32xf32> -> vector<16x32xf32>
    %157 = arith.addf %135, %156 : vector<16x32xf32>
    %c0_43 = arith.constant 0 : index
    %c0_44 = arith.constant 0 : index
    %158 = vector.load %arg5[%c0_43, %c0_44] : memref<16x32xf32, #tpu.memory_space<vmem>>, vector<16x32xf32>
    tpu.vector_store %arg5[%c0_43, %c0_44], %157 {strides = array<i32>} : memref<16x32xf32, #tpu.memory_space<vmem>>, vector<16x32xf32>,
    return
  }
  func.func @transform_0(%arg0: i32) -> (i32, i32) {
    %c0_i32 = arith.constant 0 : i32
    %c0_i32_0 = arith.constant 0 : i32
    %c0_i32_1 = arith.constant 0 : i32
    return %c0_i32, %c0_i32_0 : i32, i32
  }
  func.func @transform_1(%arg0: i32) -> (i32, i32) {
    %c0_i32 = arith.constant 0 : i32
    %c0_i32_0 = arith.constant 0 : i32
    %c0_i32_1 = arith.constant 0 : i32
    return %c0_i32, %c0_i32_0 : i32, i32
  }
  func.func @transform_2(%arg0: i32) -> (i32, i32) {
    %c0_i32 = arith.constant 0 : i32
    %c0_i32_0 = arith.constant 0 : i32
    %c0_i32_1 = arith.constant 0 : i32
    return %c0_i32, %c0_i32_0 : i32, i32
  }
  func.func @transform_3(%arg0: i32) -> (i32, i32) {
    %c0_i32 = arith.constant 0 : i32
    %c0_i32_0 = arith.constant 0 : i32
    %c0_i32_1 = arith.constant 0 : i32
    return %c0_i32, %c0_i32_0 : i32, i32
  }
  func.func @transform_4(%arg0: i32) -> (i32, i32) {
    %c0_i32 = arith.constant 0 : i32
    %c0_i32_0 = arith.constant 0 : i32
    %c0_i32_1 = arith.constant 0 : i32
    return %c0_i32, %c0_i32_0 : i32, i32
  }
}

</mosaic_0001>

<bundles_post_ra>
// kernel: fwd.1
= control target key start
LH: loop header
LB: loop body
LE: loop exit
PB: predicated region body
PF: predicated region fallthrough
CT: control target
= control target key end

     0   :  { %9 = vsyncpa [#allocation3], 0  ;;  %s1394_s0 = inlined_call_operand.hbm [shape: f32[16,32], index: 0, kind: input, shape index: {}]   ;;  %s1395_s1 = inlined_call_operand.hbm [shape: f32[16,128], index: 1, kind: input, shape index: {}]   ;;  %s1396_s2 = inlined_call_operand.hbm [shape: f32[64,128], index: 2, kind: input, shape index: {}]   ;;  %s1397_s3 = inlined_call_operand.hbm [shape: f32[96,32], index: 3, kind: input, shape index: {}]   ;;  %s1398_s4 = inlined_call_operand.hbm [shape: f32[16,32], index: 4, kind: output, shape index: {}]  }
   0x1   :  { %10 = vsyncpa [#allocation6], 0 }
   0x2   :  { %11 = vsyncpa [#allocation9], 0 }
   0x3   :  { %12 = vsyncpa [#allocation4], 0  ;;  %s30_s17 = sshll.u32 %s1395_s1, 4  ;;  %s1173_s18 = smov [#allocation5]   ;;  %s31_s17 = int_to_ptr.hbm [resolvable:$true] %s30_s17 }
   0x4   :  { %s32_s19 = sshll.u32 %s1173_s18, 4  ;;  %s17_s22 = sshll.u32 %s1394_s0, 4  ;;  %s33_s19 = int_to_ptr.vmem [resolvable:$true] %s32_s19  ;;  %s18_s22 = int_to_ptr.hbm [resolvable:$true] %s17_s22 }
   0x5   :  { %s1174_s23 = smov 128   ;;  %s1175_s24 = smov 8  }
   0x6   :  { %38 = dma.hbm_to_vmem [thread:$0]  %s31_s17, 256, %s33_s19, [#allocation6], %s1174_s23, %s1174_s23, %s1175_s24  }
   0x7   :  { %s1176_s25 = smov [#allocation2]   ;;  %s43_s1 = sshll.u32 %s1396_s2, 4  ;;  %s44_s1 = int_to_ptr.hbm [resolvable:$true] %s43_s1 }
   0x8   :  { %s19_s26 = sshll.u32 %s1176_s25, 4  ;;  %s56_s30 = sshll.u32 %s1397_s3, 4  ;;  %s20_s26 = int_to_ptr.vmem [resolvable:$true] %s19_s26  ;;  %s57_s30 = int_to_ptr.hbm [resolvable:$true] %s56_s30 }
   0x9   :  { %25 = dma.hbm_to_vmem [thread:$0]  %s18_s22, 256, %s20_s26, [#allocation3], %s1174_s23, %s1174_s23, %s1175_s24  }
   0xa   :  { %s1177_s5 = smov [#allocation7]   ;;  %s1178_s7 = smov [#allocation8]  }
   0xb   :  { %s45_s6 = sshll.u32 %s1177_s5, 4  ;;  %s58_s2 = sshll.u32 %s1178_s7, 4  ;;  %s46_s6 = int_to_ptr.vmem [resolvable:$true] %s45_s6  ;;  %s59_s2 = int_to_ptr.vmem [resolvable:$true] %s58_s2 }
   0xc   :  { %51 = dma.hbm_to_vmem [thread:$0]  %s44_s1, 1024, %s46_s6, [#allocation6], %s1174_s23, %s1174_s23, %s1175_s24  }
   0xd   :  { %64 = dma.hbm_to_vmem [thread:$0]  %s57_s30, 1536, %s59_s2, [#allocation9], %s1174_s23, %s1174_s23, %s1175_s24  }
   0xe   :  { %1165 = dma.done.wait [#allocation3], 256  }
   0xf   :  { %1166 = vsyncadd [#allocation3], 4294967040 }
  0x10   :  { %1167 = dma.done.wait [#allocation6], 1280  }
  0x11   :  { %1168 = vsyncadd [#allocation6], 4294966016 }
  0x12   :  { %1169 = dma.done.wait [#allocation9], 1536  }
  0x13   :  { %1170 = vsyncadd [#allocation9], 4294965760  ;;  %v1239_v0 = vld [vmem:[#allocation2] sm:$0xff]  ;;  %vm107_vm0 = vcmask 261120   ;;  %v1179_v3 = vmov 32.0   ;;  %v88_v6 = vld [vmem:[#allocation7 + $0x18] sm:$0xff] }
  0x14   :  { %v105_v1 = vmul.f32 %v1239_v0, %v1239_v0  ;;  %995 = vrcp.f32 %v1179_v3  ;;  %165 = vmatpush.msra.mxu0 %v88_v6  ;;  %v87_v8 = vld [vmem:[#allocation7 + $0x10] sm:$0xff]  ;;  %v86_v9 = vld [vmem:[#allocation7 + $0x8] sm:$0xff]  ;;  %v85_v10 = vld [vmem:[#allocation7] sm:$0xff]  ;;  %s1180_s3 = smov 32   ;;  %s1181_s8 = smov 16   ;;  %vm230_vm5 = vcmask 64512  }
  0x15   :  { %v83_v12 = vld [vmem:[#allocation5] sm:$0xff]  ;;  %s1182_s9 = smov 96   ;;  %s1183_s10 = smov 64   ;;  %v1265_v38 = vld [vmem:[#allocation2 + $0x8] sm:$0xff]  ;;  %v84_v43 = vld [vmem:[#allocation5 + $0x8] sm:$0xff] }
  0x16   :  { %v108_v2 = vsel %vm107_vm0, %v105_v1, 0.0  ;;  %166 = vmatpush.msra.mxu0 %v87_v8  ;;  %180 = vrot.lane.b32.xlu1 %v83_v12, %s1180_s3  ;;  %s1184_s11 = smov 120   ;;  %v106_v39 = vmul.f32 %v1265_v38, %v1265_v38  ;;  %s1185_s12 = smov 88  }
  0x17   :  { %109 = vadd.xlane.f32.xlu0 %v108_v2  ;;  %s1186_s13 = smov 80   ;;  %s1187_s14 = smov 112  }
  0x18   :  { %167 = vmatpush.msra.mxu0 %v86_v9  ;;  %v111_v40 = vsel %vm107_vm0, %v106_v39, 0.0  ;;  %s1188_s15 = smov 72   ;;  %s1189_s16 = smov [#allocation10]  }
  0x19   :  { %s924_s17 = sshll.u32 %s1189_s16, 4  ;;  %s926_s20 = sshll.u32 %s1398_s4, 4  ;;  %s925_s17 = int_to_ptr.vmem [resolvable:$true] %s924_s17  ;;  %s927_s20 = int_to_ptr.hbm [resolvable:$true] %s926_s20 }
  0x1a   :  { %v996_v4 = vpop.eup %995  ;;  %168 = vmatpush.msra.mxu0 %v85_v10 }
  0x1b   :  { %v115_v5 = vmul.f32 32.0, %v996_v4  ;;  %vm119_vm1 = vweird.f32 %v996_v4 }
  0x1d   :  { %v116_v7 = vsub.f32 1.0, %v115_v5 }
  0x1e   :  { %198 = vrot.lane.b32.xlu1 %v83_v12, %s1182_s9 }
  0x1f   :  { %v117_v11 = vmul.f32 %v996_v4, %v116_v7 }
  0x21   :  { %v118_v13 = vadd.f32 %v996_v4, %v117_v11 }
  0x23   :  { %v1246_v14 = vsel %vm119_vm1, %v996_v4, %v118_v13  ;;  %vm886_vm1 = vcmask 523264  }
  0x2b   :  { %206 = vrot.lane.b32.xlu0 %v83_v12, %s1181_s8 }
  0x88   :  { %v181_v29 = vpop.permute.xlu1 %180 }
  0x8a   :  { %v110_v15 = vpop.xlane.xlu0 %109 }
  0x8b   :  { %v121_v16 = vmul.f32 %v1246_v14, %v110_v15 }
  0x8d   :  { %v123_v17 = vadd.f32 1e-05, %v121_v16 }
  0x8f   :  { %997 = vrsqrt.f32 %v123_v17  ;;  %vm131_vm3 = vweird.f32 %v123_v17 }
  0x90   :  { %v199_v31 = vpop.permute.xlu1 %198 }
  0x95   :  { %v998_v18 = vpop.eup %997 }
  0x96   :  { %v126_v19 = vmul.f32 %v998_v18, %v123_v17  ;;  %vm132_vm2 = vweird.f32 %v998_v18 }
  0x97   :  { %vm133_vm4 = vmor %vm131_vm3, %vm132_vm2 }
  0x98   :  { %v127_v20 = vmul.f32 %v998_v18, %v126_v19 }
  0x9a   :  { %v128_v21 = vmul.f32 0.5, %v127_v20 }
  0x9c   :  { %v129_v22 = vsub.f32 1.5, %v128_v21 }
  0x9d   :  { %v207_v26 = vpop.permute.xlu0 %206 }
  0x9e   :  { %v130_v23 = vmul.f32 %v998_v18, %v129_v22 }
  0xa0   :  { %v134_v24 = vsel %vm133_vm4, %v998_v18, %v130_v23 }
  0xa1   :  { %v145_v25 = vmul.f32 %v134_v24, %v1239_v0 }
  0xa3   :  { %941 = vmatmul.msk.f32.vlgmr.msra.gmra.mxu0 %vm107_vm0, %v145_v25 }
 0x120   :  { %v1252_v27 = vpop.f32.mrf.mxu0 }
 0x121   :  { %v212_v28 = vmul.f32 %v207_v26, %v1252_v27  ;;  %v186_v30 = vmul.f32 %v181_v29, %v1252_v27  ;;  %v204_v32 = vmul.f32 %v199_v31, %v1252_v27  ;;  %v176_v35 = vmul.f32 %v1252_v27, %v83_v12  ;;  %v94_v29 = vld [vmem:[#allocation8 + $0x8] sm:$0xff] }
 0x122   :  { %333 = vmatpush.msra.mxu3 %v94_v29 }
 0x123   :  { %216 = vrot.lane.b32.xlu2 %v212_v28, %s1183_s10 }
 0x12b   :  { %190 = vrot.lane.b32.xlu2 %v186_v30, %s1183_s10 }
 0x17d   :  { %v217_v33 = vpop.permute.xlu2 %216 }
 0x17e   :  { %v222_v34 = vadd.f32 %v217_v33, %v204_v32 }
 0x180   :  { %228 = vrot.lane.b32.xlu1 %v222_v34, %s1182_s9 }
 0x185   :  { %v191_v36 = vpop.permute.xlu2 %190 }
 0x186   :  { %v1261_v37 = vadd.f32 %v191_v36, %v176_v35 }
 0x188   :  { %225 = vrot.lane.b32.xlu2 %v1261_v37, %s1184_s11 }
 0x1aa   :  { %112 = vadd.xlane.f32.xlu1 %v111_v40 }
 0x1c3   :  { %365 = vrot.lane.b32.xlu1 %v222_v34, %s1185_s12 }
 0x1cb   :  { %208 = vrot.lane.b32.xlu1 %v84_v43, %s1181_s8 }
 0x1e2   :  { %v226_v42 = vpop.permute.xlu2 %225 }
 0x1f2   :  { %v229_v41 = vpop.permute.xlu1 %228 }
 0x1f3   :  { %943 = vmatpush.xpose.msk.msra.mxu1 %vm230_vm5, %v229_v41 }
 0x1f6   :  { %944 = vmatmul.msk.f32.vlgmr.msra.gmra.mxu1 %vm230_vm5, %v1261_v37 }
 0x1fe   :  { %945 = vmatmul.msk.f32.gmra.mxu1 %vm230_vm5, %v226_v42 }
 0x21d   :  { %v113_v44 = vpop.xlane.xlu1 %112 }
 0x21e   :  { %v122_v45 = vmul.f32 %v1246_v14, %v113_v44 }
 0x220   :  { %v124_v46 = vadd.f32 1e-05, %v122_v45 }
 0x222   :  { %999 = vrsqrt.f32 %v124_v46  ;;  %vm141_vm6 = vweird.f32 %v124_v46 }
 0x228   :  { %v1000_v47 = vpop.eup %999 }
 0x229   :  { %v136_v48 = vmul.f32 %v1000_v47, %v124_v46  ;;  %vm142_vm7 = vweird.f32 %v1000_v47 }
 0x22a   :  { %vm143_vm8 = vmor %vm141_vm6, %vm142_vm7 }
 0x22b   :  { %v137_v49 = vmul.f32 %v1000_v47, %v136_v48 }
 0x22d   :  { %v138_v50 = vmul.f32 0.5, %v137_v49 }
 0x22f   :  { %v139_v51 = vsub.f32 1.5, %v138_v50 }
 0x231   :  { %v140_v52 = vmul.f32 %v1000_v47, %v139_v51 }
 0x233   :  { %v144_v53 = vsel %vm143_vm8, %v1000_v47, %v140_v52 }
 0x234   :  { %v146_v54 = vmul.f32 %v144_v53, %v1265_v38 }
 0x235   :  { %v366_v58 = vpop.permute.xlu1 %365 }
 0x236   :  { %942 = vmatmul.msk.f32.gmra.mxu0 %vm107_vm0, %v146_v54 }
 0x23d   :  { %v209_v59 = vpop.permute.xlu1 %208 }
 0x273   :  { %v254_v55 = vpop.f32.mrf.mxu1 }
 0x274   :  { %v260_v12 = vsel %vm230_vm5, %v254_v55, -inf }
 0x27b   :  { %v257_v56 = vpop.f32.mrf.mxu1 }
 0x27c   :  { %v263_v57 = vsel %vm230_vm5, %v257_v56, -inf }
 0x27d   :  { %264 = vmax.xlane.f32.xlu2 %v263_v57 }
 0x295   :  { %283 = vrot.lane.b32.xlu2 %v1252_v27, %s1186_s13 }
 0x29d   :  { %363 = vrot.lane.b32.xlu2 %v226_v42, %s1187_s14 }
 0x2a5   :  { %182 = vrot.lane.b32.xlu2 %v84_v43, %s1180_s3 }
 0x2ad   :  { %200 = vrot.lane.b32.xlu2 %v84_v43, %s1182_s9 }
 0x2b3   :  { %v1285_v60 = vpop.f32.mrf.mxu0 }
 0x2b4   :  { %v213_v61 = vmul.f32 %v209_v59, %v1285_v60  ;;  %v177_v13 = vmul.f32 %v1285_v60, %v84_v43 }
 0x2b6   :  { %218 = vrot.lane.b32.xlu2 %v213_v61, %s1183_s10  ;;  %v96_v61 = vld [vmem:[#allocation8 + $0x18] sm:$0xff] }
 0x2f0   :  { %v265_v62 = vpop.xlane.xlu2 %264 }
 0x2f1   :  { %v267_v63 = vsub.f32 %v257_v56, %v265_v62  ;;  %v93_v56 = vld [vmem:[#allocation8] sm:$0xff] }
 0x2f2   :  { %356 = vmatpush.msrb.mxu3 %v93_v56 }
 0x2f3   :  { %v270_v1 = vmul.f32 1.442695, %v267_v63 }
 0x2f5   :  { %1001 = vpow2.f32 %v270_v1 }
 0x2f8   :  { %v284_v2 = vpop.permute.xlu2 %283 }
 0x2f9   :  { %307 = vmatpush.msrb.mxu0 %v284_v2  ;;  %977 = vmatpush.msra.mxu2 %v284_v2 }
 0x2fb   :  { %950 = vmatpush.xpose.msk.msrb.mxu2 %vm230_vm5, %v366_v58  ;;  %v1002_v3 = vpop.eup %1001  ;;  %492 = vmatpush.msra.mxu0 %v96_v61 }
 0x2fc   :  { %v275_v4 = vsel %vm230_vm5, %v1002_v3, 0.0 }
 0x2fd   :  { %276 = vadd.xlane.f32.xlu0 %v275_v4 }
 0x300   :  { %v364_v5 = vpop.permute.xlu2 %363 }
 0x308   :  { %v183_v6 = vpop.permute.xlu2 %182 }
 0x309   :  { %v187_v7 = vmul.f32 %v183_v6, %v1285_v60 }
 0x30b   :  { %192 = vrot.lane.b32.xlu2 %v187_v7, %s1183_s10 }
 0x310   :  { %v201_v8 = vpop.permute.xlu2 %200 }
 0x311   :  { %361 = vrot.lane.b32.xlu0 %v1261_v37, %s1187_s14  ;;  %v205_v9 = vmul.f32 %v201_v8, %v1285_v60 }
 0x318   :  { %v219_v10 = vpop.permute.xlu2 %218 }
 0x319   :  { %v1296_v11 = vadd.f32 %v219_v10, %v205_v9 }
 0x31b   :  { %502 = vrot.lane.b32.xlu2 %v1296_v11, %s1182_s9 }
 0x33b   :  { %261 = vmax.xlane.f32.xlu0 %v260_v12 }
 0x365   :  { %v193_v15 = vpop.permute.xlu2 %192 }
 0x366   :  { %v1302_v16 = vadd.f32 %v193_v15, %v177_v13  ;;  %v95_v13 = vld [vmem:[#allocation8 + $0x10] sm:$0xff] }
 0x368   :  { %499 = vrot.lane.b32.xlu0 %v1302_v16, %s1184_s11 }
 0x370   :  { %v277_v17 = vpop.xlane.xlu0 %276 }
 0x371   :  { %1003 = vrcp.f32 %v277_v17 }
 0x375   :  { %v503_v18 = vpop.permute.xlu2 %502 }
 0x376   :  { %957 = vmatpush.xpose.msk.msrb.mxu1 %vm230_vm5, %v503_v18 }
 0x377   :  { %v1004_v19 = vpop.eup %1003 }
 0x378   :  { %v281_v20 = vmul.f32 %v1004_v19, %v1002_v3 }
 0x379   :  { %958 = vmatmul.msk.f32.vlgmr.msrb.gmra.mxu1 %vm230_vm5, %v1302_v16 }
 0x37a   :  { %947 = vmatmul.msk.f32.vlgmr.msra.gmra.mxu2 %vm230_vm5, %v281_v20  ;;  %741 = vmatpush.msra.mxu1 %v95_v13 }
 0x37b   :  { %606 = vmatpush.msra.mxu2 %v94_v29 }
 0x383   :  { %v362_v21 = vpop.permute.xlu0 %361 }
 0x384   :  { %951 = vmatmul.msk.f32.vlgmr.msrb.gmra.mxu2 %vm230_vm5, %v362_v21 }
 0x38c   :  { %952 = vmatmul.msk.f32.gmra.mxu2 %vm230_vm5, %v364_v5 }
 0x3ae   :  { %v262_v22 = vpop.xlane.xlu0 %261 }
 0x3af   :  { %v266_v23 = vsub.f32 %v254_v55, %v262_v22 }
 0x3b1   :  { %v268_v24 = vmul.f32 1.442695, %v266_v23 }
 0x3b3   :  { %1005 = vpow2.f32 %v268_v24 }
 0x3b9   :  { %v1006_v25 = vpop.eup %1005 }
 0x3ba   :  { %v272_v26 = vsel %vm230_vm5, %v1006_v25, 0.0 }
 0x3bb   :  { %273 = vadd.xlane.f32.xlu1 %v272_v26 }
 0x3da   :  { %v1313_v28 = vpop.permute.xlu0 %499 }
 0x3db   :  { %959 = vmatmul.msk.f32.gmra.mxu1 %vm230_vm5, %v1313_v28 }
 0x3f6   :  { %v527_v33 = vpop.f32.mrf.mxu1 }
 0x3f7   :  { %v533_v36 = vsel %vm230_vm5, %v527_v33, -inf }
 0x3fd   :  { %v312_v30 = vpop.f32.mrf.mxu2 }
 0x3fe   :  { %948 = vmatmul.msk.f32.vlgmr.msra.gmra.mxu3 %vm230_vm5, %v312_v30 }
 0x407   :  { %v390_v31 = vpop.f32.mrf.mxu2 }
 0x408   :  { %v396_v32 = vsel %vm230_vm5, %v390_v31, -inf }
 0x409   :  { %397 = vmax.xlane.f32.xlu2 %v396_v32 }
 0x40f   :  { %v393_v34 = vpop.f32.mrf.mxu2 }
 0x410   :  { %v399_v35 = vsel %vm230_vm5, %v393_v34, -inf }
 0x411   :  { %400 = vmax.xlane.f32.xlu1 %v399_v35  ;;  %534 = vmax.xlane.f32.xlu2 %v533_v36 }
 0x42e   :  { %v274_v37 = vpop.xlane.xlu1 %273 }
 0x42f   :  { %1007 = vrcp.f32 %v274_v37 }
 0x435   :  { %v1008_v39 = vpop.eup %1007 }
 0x436   :  { %v280_v40 = vmul.f32 %v1008_v39, %v1006_v25 }
 0x438   :  { %946 = vmatmul.msk.f32.vlgmr.msrb.gmra.mxu0 %vm230_vm5, %v280_v40 }
 0x458   :  { %v530_v58 = vpop.f32.mrf.mxu1 }
 0x459   :  { %v536_v59 = vsel %vm230_vm5, %v530_v58, -inf }
 0x47c   :  { %v398_v41 = vpop.xlane.xlu2 %397 }
 0x47d   :  { %v402_v42 = vsub.f32 %v390_v31, %v398_v41 }
 0x47f   :  { %v404_v43 = vmul.f32 1.442695, %v402_v42 }
 0x481   :  { %1009 = vpow2.f32 %v404_v43  ;;  %v335_v15 = vpop.f32.mrf.mxu3 }
 0x484   :  { %v401_v44 = vpop.xlane.xlu1 %400  ;;  %v535_v45 = vpop.xlane.xlu2 %534 }
 0x485   :  { %v403_v46 = vsub.f32 %v393_v34, %v401_v44  ;;  %v539_v47 = vsub.f32 %v527_v33, %v535_v45 }
 0x487   :  { %v1010_v48 = vpop.eup %1009  ;;  %v406_v49 = vmul.f32 1.442695, %v403_v46  ;;  %v541_v50 = vmul.f32 1.442695, %v539_v47 }
 0x488   :  { %v408_v51 = vsel %vm230_vm5, %v1010_v48, 0.0 }
 0x489   :  { %1011 = vpow2.f32 %v406_v49  ;;  %409 = vadd.xlane.f32.xlu1 %v408_v51 }
 0x48a   :  { %1013 = vpow2.f32 %v541_v50 }
 0x48f   :  { %v1012_v52 = vpop.eup %1011 }
 0x490   :  { %v1014_v53 = vpop.eup %1013  ;;  %v411_v54 = vsel %vm230_vm5, %v1012_v52, 0.0 }
 0x491   :  { %412 = vadd.xlane.f32.xlu0 %v411_v54  ;;  %v545_v55 = vsel %vm230_vm5, %v1014_v53, 0.0 }
 0x492   :  { %546 = vadd.xlane.f32.xlu2 %v545_v55 }
 0x4a2   :  { %418 = vrot.lane.b32.xlu1 %v1252_v27, %s1188_s15 }
 0x4aa   :  { %556 = vrot.lane.b32.xlu2 %v1285_v60, %s1186_s13 }
 0x4b2   :  { %634 = vrot.lane.b32.xlu2 %v1302_v16, %s1187_s14 }
 0x4b5   :  { %v309_v57 = vpop.f32.mrf.mxu0 }
 0x4b6   :  { %949 = vmatmul.msk.f32.vlgmr.msrb.gmra.mxu3 %vm230_vm5, %v309_v57 }
 0x4cc   :  { %537 = vmax.xlane.f32.xlu1 %v536_v59 }
 0x4fc   :  { %v410_v63 = vpop.xlane.xlu1 %409 }
 0x4fd   :  { %1015 = vrcp.f32 %v410_v63 }
 0x503   :  { %v1016_v2 = vpop.eup %1015 }
 0x504   :  { %v413_v27 = vpop.xlane.xlu0 %412  ;;  %v416_v3 = vmul.f32 %v1016_v2, %v1010_v48 }
 0x505   :  { %v547_v62 = vpop.xlane.xlu2 %546  ;;  %1017 = vrcp.f32 %v413_v27  ;;  %v89_v27 = vld [vmem:[#allocation7 + $0x20] sm:$0xff] }
 0x50b   :  { %v1018_v5 = vpop.eup %1017 }
 0x50c   :  { %v417_v6 = vmul.f32 %v1018_v5, %v1012_v52 }
 0x50d   :  { %v557_v1 = vpop.permute.xlu2 %556 }
 0x50e   :  { %580 = vmatpush.msrb.mxu0 %v557_v1  ;;  %v90_v1 = vld [vmem:[#allocation7 + $0x28] sm:$0xff] }
 0x514   :  { %v419_v4 = vpop.permute.xlu1 %418 }
 0x515   :  { %442 = vmatpush.msra.mxu3 %v419_v4  ;;  %v635_v32 = vpop.permute.xlu2 %634 }
 0x516   :  { %953 = vmatmul.msk.f32.vlgmr.msra.gmra.mxu3 %vm230_vm5, %v416_v3 }
 0x517   :  { %468 = vmatpush.msrb.mxu3 %v95_v13 }
 0x519   :  { %629 = vmatpush.msra.mxu3 %v93_v56 }
 0x51e   :  { %954 = vmatmul.msk.f32.gmra.mxu3 %vm230_vm5, %v417_v6 }
 0x539   :  { %v358_v16 = vpop.f32.mrf.mxu3 }
 0x53a   :  { %v359_v24 = vadd.f32 %v358_v16, %v335_v15  ;;  %v104_v15 = vld [vmem:[#allocation8 + $0x58] sm:$0xff]  ;;  %v103_v16 = vld [vmem:[#allocation8 + $0x50] sm:$0xff] }
 0x53f   :  { %v538_v7 = vpop.xlane.xlu1 %537 }
 0x540   :  { %v540_v8 = vsub.f32 %v530_v58, %v538_v7 }
 0x542   :  { %v543_v9 = vmul.f32 1.442695, %v540_v8 }
 0x544   :  { %1019 = vpow2.f32 %v543_v9 }
 0x545   :  { %1021 = vrcp.f32 %v547_v62  ;;  %v91_v62 = vld [vmem:[#allocation7 + $0x30] sm:$0xff] }
 0x54a   :  { %v1020_v10 = vpop.eup %1019 }
 0x54b   :  { %v548_v12 = vsel %vm230_vm5, %v1020_v10, 0.0  ;;  %v1022_v19 = vpop.eup %1021 }
 0x54c   :  { %549 = vadd.xlane.f32.xlu0 %v548_v12  ;;  %v553_v20 = vmul.f32 %v1022_v19, %v1014_v53  ;;  %v100_v19 = vld [vmem:[#allocation8 + $0x38] sm:$0xff] }
 0x560   :  { %638 = vrot.lane.b32.xlu0 %v1296_v11, %s1185_s12 }
 0x568   :  { %636 = vrot.lane.b32.xlu0 %v1313_v28, %s1187_s14 }
 0x599   :  { %v444_v17 = vpop.f32.mrf.mxu3 }
 0x59a   :  { %955 = vmatmul.msk.f32.vlgmr.msrb.gmra.mxu3 %vm230_vm5, %v444_v17  ;;  %v102_v17 = vld [vmem:[#allocation8 + $0x48] sm:$0xff] }
 0x5a1   :  { %v447_v18 = vpop.f32.mrf.mxu3 }
 0x5a2   :  { %956 = vmatmul.msk.f32.vlgmr.msra.gmra.mxu0 %vm230_vm5, %v447_v18  ;;  %v101_v18 = vld [vmem:[#allocation8 + $0x40] sm:$0xff] }
 0x5a3   :  { %765 = vmatpush.msra.mxu0 %v96_v61  ;;  %v92_v61 = vld [vmem:[#allocation7 + $0x38] sm:$0xff] }
 0x5a4   :  { %825 = vmatpush.msrb.mxu1 %v92_v61 }
 0x5a6   :  { %826 = vmatpush.msrb.mxu1 %v91_v62 }
 0x5a8   :  { %827 = vmatpush.msrb.mxu1 %v90_v1 }
 0x5aa   :  { %960 = vmatmul.msk.f32.vlgmr.msrb.gmra.mxu0 %vm230_vm5, %v553_v20  ;;  %828 = vmatpush.msrb.mxu1 %v89_v27  ;;  %v99_v20 = vld [vmem:[#allocation8 + $0x30] sm:$0xff] }
 0x5bf   :  { %v550_v11 = vpop.xlane.xlu0 %549 }
 0x5c0   :  { %1023 = vrcp.f32 %v550_v11  ;;  %v98_v11 = vld [vmem:[#allocation8 + $0x28] sm:$0xff] }
 0x5c6   :  { %v1024_v21 = vpop.eup %1023 }
 0x5c7   :  { %v554_v22 = vmul.f32 %v1024_v21, %v1020_v10 }
 0x5c9   :  { %961 = vmatmul.msk.f32.gmra.mxu0 %vm230_vm5, %v554_v22 }
 0x5d2   :  { %v639_v23 = vpop.permute.xlu0 %638 }
 0x5d3   :  { %964 = vmatpush.xpose.msk.msrb.mxu2 %vm230_vm5, %v639_v23 }
 0x5da   :  { %v637_v33 = vpop.permute.xlu0 %636 }
 0x61d   :  { %v470_v25 = vpop.f32.mrf.mxu3 }
 0x61e   :  { %v473_v26 = vadd.f32 %v470_v25, %v359_v24 }
 0x61f   :  { %v494_v28 = vpop.f32.mrf.mxu0 }
 0x620   :  { %v497_v29 = vadd.f32 %v494_v28, %v473_v26 }
 0x622   :  { %v1358_v50 = vadd.f32 %v497_v29, %v1239_v0 }
 0x624   :  { %v773_v51 = vmul.f32 %v1358_v50, %v1358_v50 }
 0x626   :  { %v775_v52 = vsel %vm107_vm0, %v773_v51, 0.0 }
 0x627   :  { %v582_v30 = vpop.f32.mrf.mxu0 }
 0x628   :  { %963 = vmatmul.msk.f32.vlgmr.msra.gmra.mxu3 %vm230_vm5, %v582_v30 }
 0x646   :  { %v585_v31 = vpop.f32.mrf.mxu0 }
 0x647   :  { %962 = vmatmul.msk.f32.vlgmr.msra.gmra.mxu2 %vm230_vm5, %v585_v31 }
 0x648   :  { %901 = vmatpush.msra.mxu2 %v104_v15 }
 0x64a   :  { %902 = vmatpush.msra.mxu2 %v103_v16 }
 0x64c   :  { %903 = vmatpush.msra.mxu2 %v102_v17 }
 0x64e   :  { %904 = vmatpush.msra.mxu2 %v101_v18 }
 0x64f   :  { %965 = vmatmul.msk.f32.vlgmr.msrb.gmra.mxu2 %vm230_vm5, %v635_v32 }
 0x650   :  { %905 = vmatpush.msra.mxu2 %v100_v19 }
 0x652   :  { %906 = vmatpush.msra.mxu2 %v99_v20 }
 0x654   :  { %907 = vmatpush.msra.mxu2 %v98_v11 }
 0x657   :  { %966 = vmatmul.msk.f32.gmra.mxu2 %vm230_vm5, %v637_v33 }
 0x6ab   :  { %v631_v5 = vpop.f32.mrf.mxu3 }
 0x6ca   :  { %v1349_v34 = vpop.f32.mrf.mxu2 }
 0x6cb   :  { %v632_v22 = vadd.f32 %v631_v5, %v1349_v34  ;;  %v97_v34 = vld [vmem:[#allocation8 + $0x20] sm:$0xff] }
 0x6cc   :  { %908 = vmatpush.msra.mxu2 %v97_v34 }
 0x6d2   :  { %v663_v35 = vpop.f32.mrf.mxu2 }
 0x6d3   :  { %v669_v36 = vsel %vm230_vm5, %v663_v35, -inf }
 0x6d4   :  { %670 = vmax.xlane.f32.xlu1 %v669_v36 }
 0x6da   :  { %v666_v37 = vpop.f32.mrf.mxu2 }
 0x6db   :  { %v672_v39 = vsel %vm230_vm5, %v666_v37, -inf }
 0x6dc   :  { %673 = vmax.xlane.f32.xlu2 %v672_v39 }
 0x747   :  { %v671_v40 = vpop.xlane.xlu1 %670 }
 0x748   :  { %v675_v41 = vsub.f32 %v663_v35, %v671_v40 }
 0x74a   :  { %v677_v42 = vmul.f32 1.442695, %v675_v41 }
 0x74c   :  { %1025 = vpow2.f32 %v677_v42 }
 0x74f   :  { %v674_v43 = vpop.xlane.xlu2 %673 }
 0x750   :  { %v676_v44 = vsub.f32 %v666_v37, %v674_v43 }
 0x752   :  { %v1026_v45 = vpop.eup %1025  ;;  %v679_v46 = vmul.f32 1.442695, %v676_v44 }
 0x753   :  { %v681_v47 = vsel %vm230_vm5, %v1026_v45, 0.0 }
 0x754   :  { %1027 = vpow2.f32 %v679_v46  ;;  %682 = vadd.xlane.f32.xlu0 %v681_v47 }
 0x75a   :  { %v1028_v48 = vpop.eup %1027 }
 0x75b   :  { %v684_v49 = vsel %vm230_vm5, %v1028_v48, 0.0 }
 0x75c   :  { %685 = vadd.xlane.f32.xlu1 %v684_v49 }
 0x775   :  { %691 = vrot.lane.b32.xlu1 %v1285_v60, %s1188_s15 }
 0x79f   :  { %776 = vadd.xlane.f32.xlu1 %v775_v52 }
 0x7c7   :  { %v683_v53 = vpop.xlane.xlu0 %682 }
 0x7c8   :  { %1029 = vrcp.f32 %v683_v53 }
 0x7ce   :  { %v1030_v55 = vpop.eup %1029 }
 0x7cf   :  { %v686_v54 = vpop.xlane.xlu1 %685  ;;  %v689_v56 = vmul.f32 %v1030_v55, %v1026_v45 }
 0x7d0   :  { %1031 = vrcp.f32 %v686_v54 }
 0x7d6   :  { %v1032_v60 = vpop.eup %1031 }
 0x7d7   :  { %v690_v58 = vmul.f32 %v1032_v60, %v1028_v48 }
 0x7e7   :  { %v692_v57 = vpop.permute.xlu1 %691 }
 0x7e8   :  { %715 = vmatpush.msrb.mxu3 %v692_v57 }
 0x7e9   :  { %967 = vmatmul.msk.f32.vlgmr.msrb.gmra.mxu3 %vm230_vm5, %v689_v56 }
 0x7f1   :  { %968 = vmatmul.msk.f32.gmra.mxu3 %vm230_vm5, %v690_v58 }
 0x812   :  { %v777_v0 = vpop.xlane.xlu1 %776 }
 0x813   :  { %v781_v59 = vmul.f32 %v777_v0, %v1246_v14 }
 0x815   :  { %v783_v63 = vadd.f32 1e-05, %v781_v59 }
 0x817   :  { %1033 = vrsqrt.f32 %v783_v63  ;;  %vm791_vm10 = vweird.f32 %v783_v63 }
 0x81d   :  { %v1034_v2 = vpop.eup %1033 }
 0x81e   :  { %v786_v3 = vmul.f32 %v1034_v2, %v783_v63  ;;  %vm792_vm9 = vweird.f32 %v1034_v2 }
 0x81f   :  { %vm793_vm11 = vmor %vm791_vm10, %vm792_vm9 }
 0x820   :  { %v787_v4 = vmul.f32 %v1034_v2, %v786_v3 }
 0x822   :  { %v788_v6 = vmul.f32 0.5, %v787_v4 }
 0x824   :  { %v789_v7 = vsub.f32 1.5, %v788_v6 }
 0x826   :  { %v790_v8 = vmul.f32 %v1034_v2, %v789_v7 }
 0x828   :  { %v794_v10 = vsel %vm793_vm11, %v1034_v2, %v790_v8 }
 0x829   :  { %v805_v12 = vmul.f32 %v794_v10, %v1358_v50 }
 0x86c   :  { %v717_v9 = vpop.f32.mrf.mxu3 }
 0x86d   :  { %969 = vmatmul.msk.f32.vlgmr.msra.gmra.mxu1 %vm230_vm5, %v717_v9 }
 0x874   :  { %v720_v13 = vpop.f32.mrf.mxu3 }
 0x875   :  { %970 = vmatmul.msk.f32.vlgmr.msra.gmra.mxu0 %vm230_vm5, %v720_v13  ;;  %971 = vmatmul.msk.f32.vlgmr.msrb.gmra.mxu1 %vm107_vm0, %v805_v12 }
 0x8ea   :  { %v743_v21 = vpop.f32.mrf.mxu1 }
 0x8eb   :  { %v746_v23 = vadd.f32 %v743_v21, %v632_v22 }
 0x8f2   :  { %v767_v24 = vpop.f32.mrf.mxu0  ;;  %v830_v25 = vpop.f32.mrf.mxu1 }
 0x8f3   :  { %v770_v26 = vadd.f32 %v767_v24, %v746_v23  ;;  %878 = vrot.lane.b32.xlu0 %v830_v25, %s1183_s10  ;;  %v973_v31 = vmul.f32 -1.442695, %v830_v25 }
 0x8f5   :  { %v1373_v28 = vadd.f32 %v770_v26, %v1265_v38  ;;  %1035 = vpow2.f32 %v973_v31 }
 0x8f7   :  { %v774_v29 = vmul.f32 %v1373_v28, %v1373_v28 }
 0x8f9   :  { %v778_v30 = vsel %vm107_vm0, %v774_v29, 0.0 }
 0x8fa   :  { %779 = vadd.xlane.f32.xlu2 %v778_v30 }
 0x8fb   :  { %v1036_v32 = vpop.eup %1035 }
 0x8fc   :  { %v842_v33 = vadd.f32 1.0, %v1036_v32 }
 0x8fe   :  { %1037 = vrcp.f32 %v842_v33  ;;  %v855_v38 = vand.u32 2147483648, %v842_v33  ;;  %vm849_vm13 = vweird.f32 %v842_v33  ;;  %v853_v41 = vand.u32 2147483647, %v842_v33 }
 0x900   :  { %v856_v43 = vor.u32 1.1754944e-38, %v855_v38  ;;  %vm854_vm15 = vcmp.eq.f32.partialorder %v853_v41, 8.507059e+37 }
 0x904   :  { %v1038_v35 = vpop.eup %1037 }
 0x905   :  { %v845_v36 = vmul.f32 %v1038_v35, %v842_v33  ;;  %vm850_vm12 = vweird.f32 %v1038_v35 }
 0x906   :  { %vm851_vm14 = vmor %vm849_vm13, %vm850_vm12 }
 0x907   :  { %v846_v37 = vsub.f32 1.0, %v845_v36 }
 0x909   :  { %v847_v39 = vmul.f32 %v1038_v35, %v846_v37 }
 0x90b   :  { %v848_v40 = vadd.f32 %v1038_v35, %v847_v39 }
 0x90d   :  { %v852_v42 = vsel %vm851_vm14, %v1038_v35, %v848_v40 }
 0x90e   :  { %v857_v44 = vsel %vm854_vm15, %v856_v43, %v852_v42 }
 0x90f   :  { %v874_v45 = vmul.f32 %v857_v44, %v830_v25 }
 0x965   :  { %v879_v46 = vpop.permute.xlu0 %878 }
 0x966   :  { %v884_v47 = vmul.f32 %v879_v46, %v874_v45 }
 0x968   :  { %975 = vmatmul.msk.f32.vlgmr.msra.gmra.mxu2 %vm886_vm1, %v884_v47 }
 0x96d   :  { %v780_v48 = vpop.xlane.xlu2 %779 }
 0x96e   :  { %v782_v49 = vmul.f32 %v780_v48, %v1246_v14 }
 0x970   :  { %v784_v51 = vadd.f32 1e-05, %v782_v49 }
 0x972   :  { %1039 = vrsqrt.f32 %v784_v51  ;;  %vm801_vm3 = vweird.f32 %v784_v51 }
 0x978   :  { %v1040_v52 = vpop.eup %1039 }
 0x979   :  { %v796_v53 = vmul.f32 %v1040_v52, %v784_v51  ;;  %vm802_vm2 = vweird.f32 %v1040_v52 }
 0x97a   :  { %vm803_vm4 = vmor %vm801_vm3, %vm802_vm2 }
 0x97b   :  { %v797_v54 = vmul.f32 %v1040_v52, %v796_v53 }
 0x97d   :  { %v798_v55 = vmul.f32 0.5, %v797_v54 }
 0x97f   :  { %v799_v56 = vsub.f32 1.5, %v798_v55 }
 0x981   :  { %v800_v57 = vmul.f32 %v1040_v52, %v799_v56 }
 0x983   :  { %v804_v60 = vsel %vm803_vm4, %v1040_v52, %v800_v57 }
 0x984   :  { %v806_v58 = vmul.f32 %v804_v60, %v1373_v28 }
 0x986   :  { %972 = vmatmul.msk.f32.gmra.mxu1 %vm107_vm0, %v806_v58 }
 0x9eb   :  { %v910_v0 = vpop.f32.mrf.mxu2 }
 0x9ec   :  { %v916_v59 = vadd.f32 %v910_v0, %v1358_v50 }
 0x9ee   :  { %918 = vst.msk [vmem:[#allocation10] sm:$0xff] %vm107_vm0, %v916_v59 }
 0xa03   :  { %v833_v14 = vpop.f32.mrf.mxu1 }
 0xa04   :  { %880 = vrot.lane.b32.xlu2 %v833_v14, %s1183_s10  ;;  %v974_v61 = vmul.f32 -1.442695, %v833_v14 }
 0xa06   :  { %1041 = vpow2.f32 %v974_v61 }
 0xa0c   :  { %v1042_v62 = vpop.eup %1041 }
 0xa0d   :  { %v843_v63 = vadd.f32 1.0, %v1042_v62 }
 0xa0f   :  { %1043 = vrcp.f32 %v843_v63  ;;  %v870_v5 = vand.u32 2147483648, %v843_v63  ;;  %vm864_vm6 = vweird.f32 %v843_v63  ;;  %v868_v6 = vand.u32 2147483647, %v843_v63 }
 0xa11   :  { %v871_v7 = vor.u32 1.1754944e-38, %v870_v5  ;;  %vm869_vm8 = vcmp.eq.f32.partialorder %v868_v6, 8.507059e+37 }
 0xa15   :  { %v1044_v1 = vpop.eup %1043 }
 0xa16   :  { %v860_v27 = vmul.f32 %v1044_v1, %v843_v63  ;;  %vm865_vm5 = vweird.f32 %v1044_v1 }
 0xa17   :  { %vm866_vm7 = vmor %vm864_vm6, %vm865_vm5 }
 0xa18   :  { %v861_v2 = vsub.f32 1.0, %v860_v27 }
 0xa1a   :  { %v862_v3 = vmul.f32 %v1044_v1, %v861_v2 }
 0xa1c   :  { %v863_v4 = vadd.f32 %v1044_v1, %v862_v3 }
 0xa1e   :  { %v867_v50 = vsel %vm866_vm7, %v1044_v1, %v863_v4 }
 0xa1f   :  { %v872_v8 = vsel %vm869_vm8, %v871_v7, %v867_v50 }
 0xa20   :  { %v875_v9 = vmul.f32 %v872_v8, %v833_v14 }
 0xa5e   :  { %v881_v10 = vpop.permute.xlu2 %880 }
 0xa5f   :  { %v885_v12 = vmul.f32 %v881_v10, %v875_v9 }
 0xa61   :  { %976 = vmatmul.msk.f32.gmra.mxu2 %vm886_vm1, %v885_v12 }
 0xae4   :  { %v913_v13 = vpop.f32.mrf.mxu2 }
 0xae5   :  { %v917_v15 = vadd.f32 %v913_v13, %v1373_v28 }
 0xae7   :  { %919 = vst.msk [vmem:[#allocation10 + $0x8] sm:$0xff] %vm107_vm0, %v917_v15 }
 0xae8   :  { %932 = dma.vmem_to_hbm [thread:$0]  %s925_s17, 256, %s927_s20, [#allocation4], %s1174_s23, %s1174_s23, %s1175_s24  }
 0xae9   :  { %1171 = dma.done.wait [#allocation4], 256  }
 0xaea   :  { %1172 = vsyncadd [#allocation4], 4294967040 }
 0xaeb   :  { %937 = vsyncpa [#allocation3], 1 }
 0xaec   :  { %938 = vsyncpa [#allocation6], 1 }
 0xaed   :  { %939 = vsyncpa [#allocation9], 1 }
 0xaee   :  { %940 = vsyncpa [#allocation4], 1 }

</bundles_post_ra>
